<compile_context>
chip_gen: v7x
topology: tpu7x:2x2x1
jax: 0.10.0
libtpu: 0.0.40
codegen_flags: <defaults>
</compile_context>

<pallas_src>
import functools
import math

import jax
import jax.numpy as jnp
from jax import lax
from jax.experimental import pallas as pl
from jax.experimental.pallas import tpu as pltpu

BN_EPS = 1e-5
LEAKY_SLOPE = 0.1

# Compat shim (older jax used TPUCompilerParams).
_CP = getattr(pltpu, "CompilerParams", None) or getattr(pltpu, "TPUCompilerParams")


def _nonlin(z, nonlinear):
    if nonlinear == "relu":
        return jnp.maximum(z, 0.0)
    if nonlinear == "leakyrelu":
        return jnp.where(z > 0, z, LEAKY_SLOPE * z)
    return z  # module appends no nonlinearity for other values


def _pick_batch_tile(B, bytes_per_batch, target_bytes=4 * 1024 * 1024, max_tb=8):
    """Largest divisor of B (<= max_tb) whose activation block stays <= target."""
    tb = 1
    for cand in range(1, min(B, max_tb) + 1):
        if B % cand == 0 and cand * bytes_per_batch <= target_bytes:
            tb = cand
    return tb


# ----------------------------------------------------------------- kernels --
def _eval_kernel(nonlinear, x_ref, w_ref, bias_ref, o_ref):
    """1x1 conv (BN scale pre-folded into W) + bias + activation per batch tile."""
    bias = bias_ref[...]                                   # (Cout, 1)
    for b in range(x_ref.shape[0]):                        # static TB unroll
        z = jnp.dot(w_ref[...], x_ref[b],                  # (Cout, S) on the MXU
                    preferred_element_type=jnp.float32)
        o_ref[b] = _nonlin(z + bias, nonlinear).astype(o_ref.dtype)


def _train_pass1_kernel(x_ref, w_ref, z_ref, psum_ref, pssq_ref):
    """Pass 1 (training): z = W @ x per batch tile + per-tile channel partials."""
    cout = w_ref.shape[0]
    s_acc = jnp.zeros((cout, 1), jnp.float32)
    q_acc = jnp.zeros((cout, 1), jnp.float32)
    for b in range(x_ref.shape[0]):
        z = jnp.dot(w_ref[...], x_ref[b], preferred_element_type=jnp.float32)
        z_ref[b] = z.astype(z_ref.dtype)                   # bf16 round trip by default
        s_acc = s_acc + jnp.sum(z, axis=1, keepdims=True)  # stats from f32 z
        q_acc = q_acc + jnp.sum(z * z, axis=1, keepdims=True)
    psum_ref[0] = s_acc
    pssq_ref[0] = q_acc


def _train_pass2_kernel(nonlinear, z_ref, scale_ref, bias_ref, o_ref):
    """Pass 2 (training): normalize with batch stats + activation (pure VPU)."""
    z = z_ref[...].astype(jnp.float32)                     # (TB, Cout, S)
    o_ref[...] = _nonlin(z * scale_ref[...] + bias_ref[...],
                         nonlinear).astype(o_ref.dtype)


# ---------------------------------------------------------------- wrapper --
def dim_reduce_forward(x, weight, gamma, beta, running_mean, running_var, *,
                       nonlinear="relu", training=False,
                       matmul_dtype=jnp.bfloat16, out_dtype=None):
    """DimReduceLayer forward.

    x: NCHW (B, C_in, H, W) like PyTorch; weight: (C_out, C_in, 1, 1);
    gamma/beta/running_mean/running_var: (C_out,). Returns NCHW (B, C_out, H, W).
    """
    B, Cin, H, W = x.shape
    Cout = weight.shape[0]
    S = H * W
    out_dtype = out_dtype or x.dtype

    # NCHW stays NCHW: free reshape of trailing dims, single dtype cast.
    x3 = x.reshape(B, Cin, S).astype(matmul_dtype)
    w2 = weight.reshape(Cout, Cin).astype(jnp.float32)
    gamma = gamma.astype(jnp.float32)
    beta = beta.astype(jnp.float32)

    in_isz = jnp.dtype(matmul_dtype).itemsize
    out_isz = jnp.dtype(out_dtype).itemsize
    TB = _pick_batch_tile(B, Cin * S * in_isz)
    n_steps = B // TB
    grid = (n_steps,)

    x_spec = pl.BlockSpec((TB, Cin, S), lambda i: (i, 0, 0))
    zo_spec = pl.BlockSpec((TB, Cout, S), lambda i: (i, 0, 0))
    w_spec = pl.BlockSpec((Cout, Cin), lambda i: (0, 0))        # grid-invariant
    vec_spec = pl.BlockSpec((Cout, 1), lambda i: (0, 0))        # grid-invariant
    cp = _CP(dimension_semantics=("parallel",),
             vmem_limit_bytes=32 * 1024 * 1024)

    matmul_flops = 2 * B * Cout * Cin * S

    if not training:
        # Fold BN(running stats) into the conv weight (f32 fold, then one cast).
        scale = gamma * lax.rsqrt(running_var.astype(jnp.float32) + BN_EPS)
        bias = (beta - running_mean.astype(jnp.float32) * scale).reshape(Cout, 1)
        w_folded = (w2 * scale[:, None]).astype(matmul_dtype)

        bytes_accessed = (x3.size * in_isz + w_folded.size * in_isz
                          + Cout * 4 + B * Cout * S * out_isz)
        out3 = pl.pallas_call(
            functools.partial(_eval_kernel, nonlinear),
            out_shape=jax.ShapeDtypeStruct((B, Cout, S), out_dtype),
            grid=grid,
            in_specs=[x_spec, w_spec, vec_spec],
            out_specs=zo_spec,
            compiler_params=cp,
            cost_estimate=pl.CostEstimate(flops=int(matmul_flops),
                                          transcendentals=0,
                                          bytes_accessed=int(bytes_accessed)),
        )(x3, w_folded, bias)
    else:
        wq = w2.astype(matmul_dtype)
        psum_spec = pl.BlockSpec((1, Cout, 1), lambda i: (i, 0, 0))

        # Pass 1: conv output tiles (matmul dtype) + per-tile channel partials.
        bytes_p1 = (x3.size * in_isz + wq.size * in_isz
                    + B * Cout * S * in_isz + 2 * n_steps * Cout * 4)
        z3, psum, pssq = pl.pallas_call(
            _train_pass1_kernel,
            out_shape=(jax.ShapeDtypeStruct((B, Cout, S), matmul_dtype),
                       jax.ShapeDtypeStruct((n_steps, Cout, 1), jnp.float32),
                       jax.ShapeDtypeStruct((n_steps, Cout, 1), jnp.float32)),
            grid=grid,
            in_specs=[x_spec, w_spec],
            out_specs=(zo_spec, psum_spec, psum_spec),
            compiler_params=cp,
            cost_estimate=pl.CostEstimate(flops=int(matmul_flops),
                                          transcendentals=0,
                                          bytes_accessed=int(bytes_p1)),
        )(x3, wq)

        # Tiny cross-tile reduction + BN fold in the wrapper (a few KB of work).
        count = float(B * S)
        mean = jnp.sum(psum, axis=0)[:, 0] / count                    # (Cout,)
        ex2 = jnp.sum(pssq, axis=0)[:, 0] / count
        var = jnp.maximum(ex2 - mean * mean, 0.0)                     # biased var
        scale = gamma * lax.rsqrt(var + BN_EPS)
        bias = beta - mean * scale

        # Pass 2: normalize with batch stats + activation.
        bytes_p2 = (B * Cout * S * in_isz + 2 * Cout * 4
                    + B * Cout * S * out_isz)
        out3 = pl.pallas_call(
            functools.partial(_train_pass2_kernel, nonlinear),
            out_shape=jax.ShapeDtypeStruct((B, Cout, S), out_dtype),
            grid=grid,
            in_specs=[zo_spec, vec_spec, vec_spec],
            out_specs=zo_spec,
            compiler_params=cp,
            cost_estimate=pl.CostEstimate(flops=int(3 * B * Cout * S),
                                          transcendentals=0,
                                          bytes_accessed=int(bytes_p2)),
        )(z3, scale.reshape(Cout, 1), bias.reshape(Cout, 1))

    return out3.reshape(B, Cout, H, W)


# --------------------------------------------------------------- reference --
def dim_reduce_ref(x, weight, gamma, beta, rm, rv, *, nonlinear="relu",
                   training=False):
    w2d = weight.reshape(weight.shape[0], weight.shape[1])
    z = jnp.einsum("bchw,oc->bohw", x, w2d)
    if training:
        mean = jnp.mean(z, axis=(0, 2, 3))
        var = jnp.mean((z - mean[None, :, None, None]) ** 2, axis=(0, 2, 3))
    else:
        mean, var = rm, rv
    y = (z - mean[None, :, None, None]) * lax.rsqrt(var[None, :, None, None] + BN_EPS)
    y = y * gamma[None, :, None, None] + beta[None, :, None, None]
    if nonlinear == "relu":
        y = jnp.maximum(y, 0.0)
    elif nonlinear == "leakyrelu":
        y = jnp.where(y > 0, y, LEAKY_SLOPE * y)
    return y


# --------------------------------------------------------------------- main --
if __name__ == "__main__":
    key = jax.random.PRNGKey(0)
    kx, kw, kg, kb, km, kv = jax.random.split(key, 6)

    B, Cin, H, W = 2, 64, 24, 8          # small, PCB-like feature map
    Cout = 32

    x = jax.random.normal(kx, (B, Cin, H, W), jnp.float32)
    # kaiming_normal_(mode='fan_out', relu) for the 1x1 conv
    weight = jax.random.normal(kw, (Cout, Cin, 1, 1), jnp.float32) * math.sqrt(2.0 / Cout)
    gamma = 0.5 + jax.random.uniform(kg, (Cout,), jnp.float32)
    beta = 0.1 * jax.random.normal(kb, (Cout,), jnp.float32)
    running_mean = 0.1 * jax.random.normal(km, (Cout,), jnp.float32)
    running_var = 1.0 + 0.5 * jax.random.uniform(kv, (Cout,), jnp.float32)

    # (nonlinear, training, matmul_dtype, abs tolerance)
    configs = [
        ("relu", False, jnp.float32, 3e-3),      # exact-path validation
        ("relu", True, jnp.float32, 3e-3),
        ("leakyrelu", False, jnp.float32, 3e-3),
        ("relu", False, jnp.bfloat16, 8e-2),     # default fast path (bf16 MXU)
        ("relu", True, jnp.bfloat16, 8e-2),
        ("leakyrelu", False, jnp.bfloat16, 8e-2),
    ]
    for nonlinear, training, mm_dtype, tol in configs:
        out = dim_reduce_forward(x, weight, gamma, beta, running_mean,
                                 running_var, nonlinear=nonlinear,
                                 training=training, matmul_dtype=mm_dtype)
        out = jax.block_until_ready(out)
        ref = dim_reduce_ref(x, weight, gamma, beta, running_mean, running_var,
                             nonlinear=nonlinear, training=training)
        assert out.shape == (B, Cout, H, W)
        assert bool(jnp.all(jnp.isfinite(out)))
        err = float(jnp.max(jnp.abs(out.astype(jnp.float32) - ref)))
        assert err < tol, (f"max abs err {err} ({nonlinear}, training={training}, "
                           f"dtype={mm_dtype})")

    print("KERNEL_OK")
</pallas_src>

<mosaic_0001>
module attributes {stable_mosaic.version = 11 : i64} {
  func.func @_eval_kernel(%arg0: i32, %arg1: memref<2x64x192xf32, #tpu.memory_space<vmem>>, %arg2: memref<32x64xf32, #tpu.memory_space<vmem>>, %arg3: memref<32x1xf32, #tpu.memory_space<vmem>>, %arg4: memref<2x32x192xf32, #tpu.memory_space<vmem>>) attributes {dimension_semantics = [#tpu.dimension_semantics<parallel>], iteration_bounds = array<i64: 1>, scalar_prefetch = 0 : i64, scratch_operands = 0 : i64, tpu.core_type = #tpu.core_type<tc>, window_params = [{transform_indices = @transform_0, window_bounds = array<i64: 2, 64, 192>}, {pipeline_mode = #tpu.pipeline_mode<synchronous>, transform_indices = @transform_1, window_bounds = array<i64: 32, 64>}, {pipeline_mode = #tpu.pipeline_mode<synchronous>, transform_indices = @transform_2, window_bounds = array<i64: 32, 1>}, {transform_indices = @transform_3, window_bounds = array<i64: 2, 32, 192>}]} {
    %c0 = arith.constant 0 : index
    %c0_0 = arith.constant 0 : index
    %0 = vector.load %arg3[%c0, %c0_0] : memref<32x1xf32, #tpu.memory_space<vmem>>, vector<32x1xf32>
    %c0_1 = arith.constant 0 : index
    %c0_2 = arith.constant 0 : index
    %1 = vector.load %arg2[%c0_1, %c0_2] : memref<32x64xf32, #tpu.memory_space<vmem>>, vector<32x64xf32>
    %c0_3 = arith.constant 0 : index
    %c0_4 = arith.constant 0 : index
    %c0_5 = arith.constant 0 : index
    %2 = vector.load %arg1[%c0_3, %c0_4, %c0_5] : memref<2x64x192xf32, #tpu.memory_space<vmem>>, vector<1x64x192xf32>
    %3 = vector.shape_cast %2 : vector<1x64x192xf32> to vector<64x192xf32>
    %cst = arith.constant dense<0.000000e+00> : vector<32x192xf32>
    %4 = tpu.matmul %1, %3, %cst {dimension_numbers = #tpu.dot_dimension_numbers<[1], [0], [0], [1], [0, 0, 1, 1], [], []>} : vector<32x64xf32>, vector<64x192xf32>, vector<32x192xf32> -> vector<32x192xf32>
    %5 = vector.broadcast %0 : vector<32x1xf32> to vector<32x192xf32>
    %6 = arith.addf %4, %5 : vector<32x192xf32>
    %cst_6 = arith.constant 0.000000e+00 : f32
    %7 = vector.broadcast %cst_6 : f32 to vector<32x192xf32>
    %8 = arith.maximumf %6, %7 : vector<32x192xf32>
    %c0_7 = arith.constant 0 : index
    %c0_8 = arith.constant 0 : index
    %c0_9 = arith.constant 0 : index
    %9 = vector.load %arg4[%c0_7, %c0_8, %c0_9] : memref<2x32x192xf32, #tpu.memory_space<vmem>>, vector<1x32x192xf32>
    %10 = vector.shape_cast %9 : vector<1x32x192xf32> to vector<32x192xf32>
    %11 = vector.shape_cast %8 : vector<32x192xf32> to vector<1x32x192xf32>
    tpu.vector_store %arg4[%c0_7, %c0_8, %c0_9], %11 {strides = array<i32>} : memref<2x32x192xf32, #tpu.memory_space<vmem>>, vector<1x32x192xf32>,
    %c0_10 = arith.constant 0 : index
    %c0_11 = arith.constant 0 : index
    %12 = vector.load %arg2[%c0_10, %c0_11] : memref<32x64xf32, #tpu.memory_space<vmem>>, vector<32x64xf32>
    %c1 = arith.constant 1 : index
    %c0_12 = arith.constant 0 : index
    %c0_13 = arith.constant 0 : index
    %13 = vector.load %arg1[%c1, %c0_12, %c0_13] : memref<2x64x192xf32, #tpu.memory_space<vmem>>, vector<1x64x192xf32>
    %14 = vector.shape_cast %13 : vector<1x64x192xf32> to vector<64x192xf32>
    %cst_14 = arith.constant dense<0.000000e+00> : vector<32x192xf32>
    %15 = tpu.matmul %12, %14, %cst_14 {dimension_numbers = #tpu.dot_dimension_numbers<[1], [0], [0], [1], [0, 0, 1, 1], [], []>} : vector<32x64xf32>, vector<64x192xf32>, vector<32x192xf32> -> vector<32x192xf32>
    %16 = vector.broadcast %0 : vector<32x1xf32> to vector<32x192xf32>
    %17 = arith.addf %15, %16 : vector<32x192xf32>
    %cst_15 = arith.constant 0.000000e+00 : f32
    %18 = vector.broadcast %cst_15 : f32 to vector<32x192xf32>
    %19 = arith.maximumf %17, %18 : vector<32x192xf32>
    %c1_16 = arith.constant 1 : index
    %c0_17 = arith.constant 0 : index
    %c0_18 = arith.constant 0 : index
    %20 = vector.load %arg4[%c1_16, %c0_17, %c0_18] : memref<2x32x192xf32, #tpu.memory_space<vmem>>, vector<1x32x192xf32>
    %21 = vector.shape_cast %20 : vector<1x32x192xf32> to vector<32x192xf32>
    %22 = vector.shape_cast %19 : vector<32x192xf32> to vector<1x32x192xf32>
    tpu.vector_store %arg4[%c1_16, %c0_17, %c0_18], %22 {strides = array<i32>} : memref<2x32x192xf32, #tpu.memory_space<vmem>>, vector<1x32x192xf32>,
    return
  }
  func.func @transform_0(%arg0: i32) -> (i32, i32, i32) {
    %c0_i32 = arith.constant 0 : i32
    %c0_i32_0 = arith.constant 0 : i32
    %c0_i32_1 = arith.constant 0 : i32
    return %arg0, %c0_i32, %c0_i32_0 : i32, i32, i32
  }
  func.func @transform_1(%arg0: i32) -> (i32, i32) {
    %c0_i32 = arith.constant 0 : i32
    %c0_i32_0 = arith.constant 0 : i32
    %c0_i32_1 = arith.constant 0 : i32
    return %c0_i32, %c0_i32_0 : i32, i32
  }
  func.func @transform_2(%arg0: i32) -> (i32, i32) {
    %c0_i32 = arith.constant 0 : i32
    %c0_i32_0 = arith.constant 0 : i32
    %c0_i32_1 = arith.constant 0 : i32
    return %c0_i32, %c0_i32_0 : i32, i32
  }
  func.func @transform_3(%arg0: i32) -> (i32, i32, i32) {
    %c0_i32 = arith.constant 0 : i32
    %c0_i32_0 = arith.constant 0 : i32
    %c0_i32_1 = arith.constant 0 : i32
    return %arg0, %c0_i32, %c0_i32_0 : i32, i32, i32
  }
}

</mosaic_0001>

<bundles_post_ra>
// kernel: tpu_custom_call.1
= control target key start
LH: loop header
LB: loop body
LE: loop exit
PB: predicated region body
PF: predicated region fallthrough
CT: control target
= control target key end

     0   :  { %8 = vsyncpa [#allocation3], 0  ;;  %s547_s0 = inlined_call_operand.hbm [shape: f32[2,64,192], index: 0, kind: input, shape index: {}]   ;;  %s548_s1 = inlined_call_operand.vmem [shape: f32[32,64], index: 1, kind: input, shape index: {}]   ;;  %s549_s2 = inlined_call_operand.vmem [shape: f32[32,1], index: 2, kind: input, shape index: {}]   ;;  %s550_s3 = inlined_call_operand.hbm [shape: f32[2,32,192], index: 3, kind: output, shape index: {}]  }
   0x1   :  { %9 = vsyncpa [#allocation4], 0  ;;  %s443_s12 = smov [#allocation2]   ;;  %s395_s16 = scalar_lea.hbm %s547_s0, 4096 }
   0x2   :  { %s15_s13 = sshll.u32 %s443_s12, 4  ;;  %p396_p0 = scmp.ne.s32.totalorder %s547_s0, %s395_s16  ;;  %s16_s13 = int_to_ptr.vmem [resolvable:$true] %s15_s13 }
   0x3   :  { %p399_p1 = scmp.lt.u32.totalorder %s395_s16, %s547_s0 }
   0x5   :  { %p401_p2 = pnand %p399_p1, %p396_p0 }
   0x7   :  { %404 = shalt.err (!%p401_p2)
}
   0x8   :  { %s405_s21 = scalar_lea.vmem %s16_s13, 4096  ;;  %p410_p4 = scmp.lt.s32.totalorder %s16_s13, %s16_s13 }
   0x9   :  { %p406_p3 = scmp.ne.s32.totalorder %s16_s13, %s405_s21  ;;  %p411_p5 = scmp.lt.s32.totalorder %s405_s21, %s405_s21 }
   0xb   :  { %p412_p6 = por %p411_p5, %p410_p4 }
   0xd   :  { %p413_p7 = pnand %p412_p6, %p406_p3 }
   0xf   :  { %416 = shalt.err (!%p413_p7)
}
  0x10   :  { %s444_s22 = smov 256   ;;  %s445_s23 = smov 16  }
  0x11   :  { %21 = dma.hbm_to_vmem [thread:$0]  %s547_s0, 4096, %s16_s13, [#allocation3], %s444_s22, %s444_s22, %s445_s23  }
  0x12   :  { %439 = dma.done.wait [#allocation3], 4096  }
  0x13   :  { %440 = vsyncadd [#allocation3], 4294963200  ;;  %v446_v0 = vmov 0.0   ;;  %v447_v1 = vmov 0   ;;  %v38_v2 = vld [vmem:[#allocation2 + $0x8] sm:$0xff]  ;;  %v40_v3 = vld [vmem:[#allocation2 + $0x18] sm:$0xff] }
  0x14   :  { %150 = vmatprep.mubr.f32.mxu0 %v446_v0  ;;  %288 = vmatprep.mubr.f32.mxu1 %v446_v0  ;;  %v197_v4 = vld [vmem:[#allocation2 + $0x88] sm:$0xff]  ;;  %v355_v5 = vpack.c.bf16 %v40_v3, %v38_v2  ;;  %v199_v6 = vld [vmem:[#allocation2 + $0x98] sm:$0xff]  ;;  %v37_v7 = vld [vmem:[#allocation2] sm:$0xff]  ;;  %vm73_vm0 = vcmask 523264  }
  0x15   :  { %393 = vset.pattern.permute.xlu0 %v447_v1  ;;  %394 = vset.pattern.permute.xlu1 %v447_v1  ;;  %v39_v8 = vld [vmem:[#allocation2 + $0x10] sm:$0xff]  ;;  %v371_v9 = vpack.c.bf16 %v199_v6, %v197_v4  ;;  %v196_v11 = vld [vmem:[#allocation2 + $0x80] sm:$0xff]  ;;  %v42_v13 = vld [vmem:[#allocation2 + $0x28] sm:$0xff] }
  0x16   :  { %v357_v10 = vpack.c.bf16 %v39_v8, %v37_v7  ;;  %v198_v12 = vld [vmem:[#allocation2 + $0x90] sm:$0xff]  ;;  %356 = vmatprep.subr.bf16.mxu0 %v355_v5  ;;  %v44_v15 = vld [vmem:[#allocation2 + $0x38] sm:$0xff]  ;;  %v201_v16 = vld [vmem:[#allocation2 + $0xa8] sm:$0xff] }
  0x17   :  { %v373_v14 = vpack.c.bf16 %v198_v12, %v196_v11  ;;  %v203_v17 = vld [vmem:[#allocation2 + $0xb8] sm:$0xff]  ;;  %372 = vmatprep.subr.bf16.mxu1 %v371_v9  ;;  %v359_v18 = vpack.c.bf16 %v44_v15, %v42_v13  ;;  %v41_v20 = vld [vmem:[#allocation2 + $0x20] sm:$0xff]  ;;  %v43_v21 = vld [vmem:[#allocation2 + $0x30] sm:$0xff] }
  0x18   :  { %358 = vmatpush1.bf16.msra.mxu0 %v357_v10  ;;  %v375_v19 = vpack.c.bf16 %v203_v17, %v201_v16  ;;  %v200_v22 = vld [vmem:[#allocation2 + $0xa0] sm:$0xff]  ;;  %v361_v23 = vpack.c.bf16 %v43_v21, %v41_v20  ;;  %v202_v24 = vld [vmem:[#allocation2 + $0xb0] sm:$0xff]  ;;  %v46_v25 = vld [vmem:[#allocation2 + $0x48] sm:$0xff] }
  0x19   :  { %374 = vmatpush1.bf16.msra.mxu1 %v373_v14  ;;  %v48_v26 = vld [vmem:[#allocation2 + $0x58] sm:$0xff]  ;;  %360 = vmatprep.subr.bf16.mxu0 %v359_v18  ;;  %v377_v27 = vpack.c.bf16 %v202_v24, %v200_v22  ;;  %v205_v29 = vld [vmem:[#allocation2 + $0xc8] sm:$0xff]  ;;  %v45_v31 = vld [vmem:[#allocation2 + $0x40] sm:$0xff] }
  0x1a   :  { %376 = vmatprep.subr.bf16.mxu1 %v375_v19  ;;  %v363_v28 = vpack.c.bf16 %v48_v26, %v46_v25  ;;  %v207_v30 = vld [vmem:[#allocation2 + $0xd8] sm:$0xff]  ;;  %v47_v33 = vld [vmem:[#allocation2 + $0x50] sm:$0xff]  ;;  %v204_v34 = vld [vmem:[#allocation2 + $0xc0] sm:$0xff] }
  0x1b   :  { %v379_v32 = vpack.c.bf16 %v207_v30, %v205_v29  ;;  %v206_v35 = vld [vmem:[#allocation2 + $0xd0] sm:$0xff]  ;;  %v365_v36 = vpack.c.bf16 %v47_v33, %v45_v31  ;;  %v50_v37 = vld [vmem:[#allocation2 + $0x68] sm:$0xff]  ;;  %v52_v38 = vld [vmem:[#allocation2 + $0x78] sm:$0xff] }
  0x1c   :  { %362 = vmatpush1.bf16.msra.mxu0 %v361_v23  ;;  %v209_v39 = vld [vmem:[#allocation2 + $0xe8] sm:$0xff]  ;;  %v381_v40 = vpack.c.bf16 %v206_v35, %v204_v34  ;;  %v367_v41 = vpack.c.bf16 %v52_v38, %v50_v37  ;;  %v211_v42 = vld [vmem:[#allocation2 + $0xf8] sm:$0xff]  ;;  %v49_v43 = vld [vmem:[#allocation2 + $0x60] sm:$0xff] }
  0x1d   :  { %378 = vmatpush1.bf16.msra.mxu1 %v377_v27  ;;  %364 = vmatprep.subr.bf16.mxu0 %v363_v28  ;;  %v51_v44 = vld [vmem:[#allocation2 + $0x70] sm:$0xff]  ;;  %v383_v45 = vpack.c.bf16 %v211_v42, %v209_v39  ;;  %v208_v46 = vld [vmem:[#allocation2 + $0xe0] sm:$0xff]  ;;  %v30_v52 = vld [vmem:[%s549_s2 + $0x8] sm:$0xff] }
  0x1e   :  { %380 = vmatprep.subr.bf16.mxu1 %v379_v32  ;;  %v210_v47 = vld [vmem:[#allocation2 + $0xf0] sm:$0xff]  ;;  %v369_v48 = vpack.c.bf16 %v51_v44, %v49_v43  ;;  %v29_v49 = vld [vmem:[%s549_s2] sm:$0xff]  ;;  %v32_v54 = vld [vmem:[%s549_s2 + $0x18] sm:$0xff] }
  0x1f   :  { %v31_v50 = vld [vmem:[%s549_s2 + $0x10] sm:$0xff]  ;;  %v385_v51 = vpack.c.bf16 %v210_v47, %v208_v46  ;;  %55 = vperm.xlu0 %393, %v29_v49   ;;  %v33_v53 = vld [vmem:[%s548_s1] sm:$0xff]  ;;  %v34_v55 = vld [vmem:[%s548_s1 + $0x8] sm:$0xff] }
  0x20   :  { %366 = vmatpush1.bf16.msra.mxu0 %v365_v36  ;;  %65 = vperm.xlu1 %394, %v31_v50   ;;  %v35_v56 = vld [vmem:[%s548_s1 + $0x10] sm:$0xff]  ;;  %v36_v57 = vld [vmem:[%s548_s1 + $0x18] sm:$0xff]  ;;  %s448_s1 = smov [#allocation5]  }
  0x21   :  { %382 = vmatpush1.bf16.msra.mxu1 %v381_v40  ;;  %368 = vmatprep.subr.bf16.mxu0 %v367_v41  ;;  %s335_s13 = sshll.u32 %s448_s1, 4  ;;  %s336_s13 = int_to_ptr.vmem [resolvable:$true] %s335_s13 }
  0x22   :  { %384 = vmatprep.subr.bf16.mxu1 %v383_v45  ;;  %s417_s14 = scalar_lea.vmem %s336_s13, 2048  ;;  %p422_p9 = scmp.lt.s32.totalorder %s336_s13, %s336_s13 }
  0x23   :  { %60 = vperm.xlu0 %393, %v30_v52   ;;  %p418_p8 = scmp.ne.s32.totalorder %s336_s13, %s417_s14  ;;  %p423_p10 = scmp.lt.s32.totalorder %s417_s14, %s417_s14 }
  0x24   :  { %370 = vmatpush1.bf16.msra.mxu0 %v369_v48  ;;  %70 = vperm.xlu1 %394, %v32_v54  }
  0x25   :  { %386 = vmatpush1.bf16.msra.mxu1 %v385_v51  ;;  %p424_p11 = por %p423_p10, %p422_p9 }
  0x27   :  { %347 = vmatmul.mubr.msk.f32.vlgmr.msra.gmra.mrb[0].mxu0 %vm73_vm0, %v33_v53  ;;  %p425_p12 = pnand %p424_p11, %p418_p8 }
  0x28   :  { %351 = vmatmul.mubr.msk.f32.vlgmr.msra.gmra.mrb[0].mxu1 %vm73_vm0, %v33_v53  ;;  %156 = vmatprep.mubr.f32.mxu0 %v446_v0 }
  0x29   :  { %294 = vmatprep.mubr.f32.mxu1 %v446_v0 }
  0x2b   :  { %348 = vmatmul.mubr.msk.f32.gmra.mrb[2].mxu0 %vm73_vm0, %v34_v55 }
  0x2c   :  { %352 = vmatmul.mubr.msk.f32.gmra.mrb[2].mxu1 %vm73_vm0, %v34_v55  ;;  %162 = vmatprep.mubr.f32.mxu0 %v446_v0 }
  0x2d   :  { %300 = vmatprep.mubr.f32.mxu1 %v446_v0 }
  0x2f   :  { %349 = vmatmul.mubr.msk.f32.gmra.mrb[4].mxu0 %vm73_vm0, %v35_v56 }
  0x30   :  { %353 = vmatmul.mubr.msk.f32.gmra.mrb[4].mxu1 %vm73_vm0, %v35_v56  ;;  %168 = vmatprep.mubr.f32.mxu0 %v446_v0 }
  0x31   :  { %306 = vmatprep.mubr.f32.mxu1 %v446_v0 }
  0x33   :  { %350 = vmatmul.mubr.msk.f32.gmra.mrb[6].mxu0 %vm73_vm0, %v36_v57 }
  0x34   :  { %354 = vmatmul.mubr.msk.f32.gmra.mrb[6].mxu1 %vm73_vm0, %v36_v57 }
  0x9e   :  { %v56_v58 = vpop.permute.xlu0 %55 }
  0x9f   :  { %v66_v15 = vpop.permute.xlu1 %65 }
  0xa2   :  { %v61_v3 = vpop.permute.xlu0 %60 }
  0xa3   :  { %v71_v32 = vpop.permute.xlu1 %70 }
  0xfa   :  { %v152_v59 = vpop.f32.mrb[0].mxu0 }
  0xfb   :  { %v290_v60 = vpop.f32.mrb[0].mxu1  ;;  %v153_v61 = vadd.f32 %v152_v59, %v56_v58  ;;  %v154_v62 = vpop.f32.mrb[1].mxu0 }
  0xfc   :  { %v291_v63 = vadd.f32 %v290_v60, %v56_v58  ;;  %v155_v1 = vadd.f32 %v154_v62, %v56_v58  ;;  %v292_v2 = vpop.f32.mrb[1].mxu1 }
  0xfd   :  { %v175_v4 = vmax.f32 %v153_v61, 0.0  ;;  %v293_v5 = vadd.f32 %v292_v2, %v56_v58 }
  0xfe   :  { %v313_v6 = vmax.f32 %v291_v63, 0.0  ;;  %v176_v7 = vmax.f32 %v155_v1, 0.0  ;;  %v158_v8 = vpop.f32.mrb[2].mxu0 }
  0xff   :  { %183 = vst [vmem:[#allocation5] sm:$0xff] %v175_v4  ;;  %v314_v0 = vmax.f32 %v293_v5, 0.0  ;;  %v296_v9 = vpop.f32.mrb[2].mxu1  ;;  %v159_v10 = vadd.f32 %v158_v8, %v61_v3  ;;  %v160_v11 = vpop.f32.mrb[3].mxu0 }
 0x100   :  { %322 = vst [vmem:[#allocation5 + $0x40] sm:$0xff] %v313_v6  ;;  %184 = vst.msk [vmem:[#allocation5 + $0x8] sm:$0xff] %vm73_vm0, %v176_v7  ;;  %v297_v12 = vadd.f32 %v296_v9, %v61_v3  ;;  %v161_v13 = vadd.f32 %v160_v11, %v61_v3  ;;  %v298_v14 = vpop.f32.mrb[3].mxu1 }
 0x101   :  { %323 = vst.msk [vmem:[#allocation5 + $0x48] sm:$0xff] %vm73_vm0, %v314_v0  ;;  %v177_v16 = vmax.f32 %v159_v10, 0.0  ;;  %v299_v17 = vadd.f32 %v298_v14, %v61_v3 }
 0x102   :  { %v315_v18 = vmax.f32 %v297_v12, 0.0  ;;  %v178_v19 = vmax.f32 %v161_v13, 0.0  ;;  %v164_v20 = vpop.f32.mrb[4].mxu0 }
 0x103   :  { %185 = vst [vmem:[#allocation5 + $0x10] sm:$0xff] %v177_v16  ;;  %v316_v21 = vmax.f32 %v299_v17, 0.0  ;;  %v165_v22 = vadd.f32 %v164_v20, %v66_v15  ;;  %v302_v23 = vpop.f32.mrb[4].mxu1  ;;  %v166_v24 = vpop.f32.mrb[5].mxu0 }
 0x104   :  { %324 = vst [vmem:[#allocation5 + $0x50] sm:$0xff] %v315_v18  ;;  %186 = vst.msk [vmem:[#allocation5 + $0x18] sm:$0xff] %vm73_vm0, %v178_v19  ;;  %v303_v25 = vadd.f32 %v302_v23, %v66_v15  ;;  %v167_v26 = vadd.f32 %v166_v24, %v66_v15  ;;  %v304_v27 = vpop.f32.mrb[5].mxu1 }
 0x105   :  { %325 = vst.msk [vmem:[#allocation5 + $0x58] sm:$0xff] %vm73_vm0, %v316_v21  ;;  %v179_v28 = vmax.f32 %v165_v22, 0.0  ;;  %v305_v29 = vadd.f32 %v304_v27, %v66_v15 }
 0x106   :  { %v317_v30 = vmax.f32 %v303_v25, 0.0  ;;  %v180_v31 = vmax.f32 %v167_v26, 0.0  ;;  %v170_v33 = vpop.f32.mrb[6].mxu0 }
 0x107   :  { %187 = vst [vmem:[#allocation5 + $0x20] sm:$0xff] %v179_v28  ;;  %v318_v34 = vmax.f32 %v305_v29, 0.0  ;;  %v171_v35 = vadd.f32 %v170_v33, %v71_v32  ;;  %v308_v36 = vpop.f32.mrb[6].mxu1  ;;  %v172_v37 = vpop.f32.mrb[7].mxu0 }
 0x108   :  { %326 = vst [vmem:[#allocation5 + $0x60] sm:$0xff] %v317_v30  ;;  %188 = vst.msk [vmem:[#allocation5 + $0x28] sm:$0xff] %vm73_vm0, %v180_v31  ;;  %v309_v38 = vadd.f32 %v308_v36, %v71_v32  ;;  %v173_v39 = vadd.f32 %v172_v37, %v71_v32  ;;  %v310_v40 = vpop.f32.mrb[7].mxu1 }
 0x109   :  { %327 = vst.msk [vmem:[#allocation5 + $0x68] sm:$0xff] %vm73_vm0, %v318_v34  ;;  %v181_v41 = vmax.f32 %v171_v35, 0.0  ;;  %v311_v42 = vadd.f32 %v310_v40, %v71_v32 }
 0x10a   :  { %v319_v43 = vmax.f32 %v309_v38, 0.0  ;;  %v182_v44 = vmax.f32 %v173_v39, 0.0 }
 0x10b   :  { %189 = vst [vmem:[#allocation5 + $0x30] sm:$0xff] %v181_v41  ;;  %v320_v45 = vmax.f32 %v311_v42, 0.0 }
 0x10c   :  { %328 = vst [vmem:[#allocation5 + $0x70] sm:$0xff] %v319_v43  ;;  %190 = vst.msk [vmem:[#allocation5 + $0x38] sm:$0xff] %vm73_vm0, %v182_v44 }
 0x10d   :  { %329 = vst.msk [vmem:[#allocation5 + $0x78] sm:$0xff] %vm73_vm0, %v320_v45 }
 0x10e   :  { %428 = shalt.err (!%p425_p12)
}
 0x10f   :  { %s429_s17 = scalar_lea.hbm %s550_s3, 2048 }
 0x110   :  { %p430_p13 = scmp.ne.s32.totalorder %s550_s3, %s429_s17  ;;  %p433_p0 = scmp.lt.u32.totalorder %s429_s17, %s550_s3 }
 0x112   :  { %p435_p1 = pnand %p433_p0, %p430_p13 }
 0x114   :  { %438 = shalt.err (!%p435_p1)
}
 0x115   :  { %341 = dma.vmem_to_hbm [thread:$0]  %s336_s13, 2048, %s550_s3, [#allocation4], %s444_s22, %s444_s22, %s445_s23  }
 0x116   :  { %441 = dma.done.wait [#allocation4], 2048  }
 0x117   :  { %442 = vsyncadd [#allocation4], 4294965248 }
 0x118   :  { %345 = vsyncpa [#allocation3], 1 }
 0x119   :  { %346 = vsyncpa [#allocation4], 1 }

</bundles_post_ra>
